<compile_context>
chip_gen: v5e
topology: v5e:2x2
jax: 0.10.0
libtpu: 0.0.40
codegen_flags: <defaults>
</compile_context>

<pallas_src>
import jax
import jax.numpy as jnp
from jax import lax
from jax.experimental import pallas as pl
from jax.experimental.pallas import tpu as pltpu

EMB_DIM = 5      # nn.Linear(1, 5)
EPS = 1e-8
# Route tiny problems through the fused lane-dense path.
_SMALL_OUT_BYTES = 256 * 1024
# Keep the double-buffered out tile within the v5e 16 MiB scoped-VMEM default.
_VMEM_OUT_BUDGET = 12 * 1024 * 1024


def _flat_kernel(s_ref, xn_ref, xm_ref, o_ref):
    """Fused lane-dense path.  xn/xm/o are (B, N*N); xn[b,k]=x[b,k//N], xm[b,k]=x[b,k%N]."""
    ww = s_ref[0]   # |w|^2
    wb = s_ref[1]   # w.b
    bb = s_ref[2]   # |b|^2

    xn = xn_ref[...]
    xm = xm_ref[...]

    sq_n = (xn * xn) * ww + (2.0 * wb) * xn + bb
    sq_m = (xm * xm) * ww + (2.0 * wb) * xm + bb
    inv_n = lax.rsqrt(jnp.maximum(sq_n, EPS * EPS))   # EUP rsqrt; 1/max(|emb|, eps)
    inv_m = lax.rsqrt(jnp.maximum(sq_m, EPS * EPS))

    dot = (xn * ww + wb) * xm + (xn * wb + bb)
    half = dot * inv_n * (0.5 * inv_m)                # sim / 2
    # sigmoid(x) = 0.5 * tanh(x/2) + 0.5   (single EUP tanh, no divide)
    o_ref[...] = (0.5 * jnp.tanh(half) + 0.5).astype(o_ref.dtype)


def _tiled_kernel(s_ref, xc_ref, xr_ref, o_ref):
    """Row-tiled path.  xc: (1, TM, 1), xr: (1, 1, N), o: (1, TM, N)."""
    ww = s_ref[0]
    wb = s_ref[1]
    bb = s_ref[2]

    xc = xc_ref[...]                                   # (1, TM, 1)
    xr = xr_ref[...]                                   # (1, 1, N)

    sq_c = (xc * xc) * ww + (2.0 * wb) * xc + bb
    inv_c = lax.rsqrt(jnp.maximum(sq_c, EPS * EPS))    # (1, TM, 1)
    sq_r = (xr * xr) * ww + (2.0 * wb) * xr + bb
    inv_r = lax.rsqrt(jnp.maximum(sq_r, EPS * EPS))    # (1, 1, N)

    # Fold normalization + sigmoid constants into the narrow O(N) factors so the
    # O(N^2) broadcast does only ~5 VALU ops + 1 EUP tanh per output element.
    row_a = (xc * ww + wb) * inv_c                     # (1, TM, 1)
    row_c = (xc * wb + bb) * inv_c                     # (1, TM, 1)
    col_h = 0.5 * inv_r                                # (1, 1, N)

    half = (row_a * xr + row_c) * col_h                # (1, TM, N) broadcast = sim/2
    o_ref[...] = (0.5 * jnp.tanh(half) + 0.5).astype(o_ref.dtype)


def _pick_tm(n, out_bytes):
    """Largest row-tile (multiple of 8, <= 512) s.t. 2*TM*N*bytes <= VMEM budget."""
    tm = _VMEM_OUT_BUDGET // (2 * n * out_bytes)
    tm = max(8, min(512, tm))
    tm = (tm // 8) * 8
    if tm >= n:
        return n              # whole row range in one tile (block dim == full dim)
    return tm


def cossim_mlp(prop_state, weight, bias, *, tm=None, out_dtype=jnp.float32):
    """prop_state: (B, N, 1) f32, weight: (5, 1) f32, bias: (5,) f32 -> (B, N, N).

    out_dtype=jnp.bfloat16 halves the dominant HBM write traffic (compute stays
    f32; cast only at the store) if downstream consumers allow it.
    """
    B, N, s_dim = prop_state.shape
    assert s_dim == 1, "nn.Linear(1, 5) requires state_dim == 1"

    x = prop_state.astype(jnp.float32)                 # (B, N, 1)
    w = weight.astype(jnp.float32)[:, 0]               # (5,)
    b = bias.astype(jnp.float32)                       # (5,)
    scalars = jnp.stack([jnp.dot(w, w), jnp.dot(w, b), jnp.dot(b, b)])  # (3,)

    out_bytes = jnp.dtype(out_dtype).itemsize
    total_out_bytes = B * N * N * out_bytes

    if tm is None and total_out_bytes <= _SMALL_OUT_BYTES:
        # ---- Fused lane-dense path (tiny problems / narrow N). ----
        # Wrapper-side layout plumbing: expand x to the flat (B, N*N) index
        # structure so stores are lane-dense (N*N lanes instead of N).
        nn = N * N
        xb = x[:, :, 0]                                                    # (B, N)
        xn = jnp.broadcast_to(xb[:, :, None], (B, N, N)).reshape(B, nn)    # x[b, k//N]
        xm = jnp.broadcast_to(xb[:, None, :], (B, N, N)).reshape(B, nn)    # x[b, k%N]

        out_flat = pl.pallas_call(
            _flat_kernel,
            out_shape=jax.ShapeDtypeStruct((B, nn), out_dtype),
            grid_spec=pltpu.PrefetchScalarGridSpec(
                num_scalar_prefetch=0,
                grid=(1,),
                in_specs=[
                    pl.BlockSpec(memory_space=pltpu.MemorySpace.SMEM),   # 3 param scalars
                    pl.BlockSpec((B, nn), lambda i: (0, 0)),
                    pl.BlockSpec((B, nn), lambda i: (0, 0)),
                ],
                out_specs=pl.BlockSpec((B, nn), lambda i: (0, 0)),
            ),
            compiler_params=pltpu.CompilerParams(
                dimension_semantics=("arbitrary",)),
        )(scalars, xn, xm)
        return out_flat.reshape(B, N, N)

    # ---- Row-tiled path: grid = (B, ceil(N / TM)), full-N lane-dense columns. ----
    if tm is None:
        tm = _pick_tm(N, out_bytes)
    tm = min(tm, N)
    assert tm == N or tm % 8 == 0, "row tile must be a multiple of 8 (or the full N)"
    assert 2 * tm * N * out_bytes <= 14 * 1024 * 1024, (
        "double-buffered out tile would bust the v5e scoped-VMEM default")

    x_col = x                                          # (B, N, 1)
    x_row = jnp.transpose(x, (0, 2, 1))                # (B, 1, N) (no in-kernel transpose)
    grid = (B, pl.cdiv(N, tm))

    return pl.pallas_call(
        _tiled_kernel,
        out_shape=jax.ShapeDtypeStruct((B, N, N), out_dtype),
        grid_spec=pltpu.PrefetchScalarGridSpec(
            num_scalar_prefetch=0,
            grid=grid,
            in_specs=[
                pl.BlockSpec(memory_space=pltpu.MemorySpace.SMEM),       # 3 param scalars
                pl.BlockSpec((1, tm, 1), lambda bb, i: (bb, i, 0)),      # row strip of x
                pl.BlockSpec((1, 1, N), lambda bb, i: (bb, 0, 0)),       # full row of x
            ],
            out_specs=pl.BlockSpec((1, tm, N), lambda bb, i: (bb, i, 0)),
        ),
        compiler_params=pltpu.CompilerParams(
            dimension_semantics=("parallel", "parallel")),
    )(scalars, x_col, x_row)


def cossim_mlp_reference(prop_state, weight, bias):
    emb = jnp.einsum("bni,oi->bno", prop_state, weight) + bias
    nrm = jnp.sqrt(jnp.sum(emb * emb, axis=-1, keepdims=True))
    a_norm = emb / jnp.maximum(nrm, EPS)
    sim = jnp.einsum("bnd,bmd->bnm", a_norm, a_norm)
    return jax.nn.sigmoid(sim)


if __name__ == "__main__":
    key = jax.random.PRNGKey(0)
    k_x, k_w, k_b, k_x2 = jax.random.split(key, 4)

    # Parameters matching _initialization(): weight ~ N(0, 0.02), bias filled 0.
    weight = 0.02 * jax.random.normal(k_w, (EMB_DIM, 1), dtype=jnp.float32)
    bias0 = jnp.zeros((EMB_DIM,), dtype=jnp.float32)
    bias1 = 0.02 * jax.random.normal(k_b, (EMB_DIM,), dtype=jnp.float32)

    # Small shapes (batchSize=2, n_node=16, state_dim=1) -> fused lane-dense path.
    B, N = 2, 16
    prop_state = jax.random.normal(k_x, (B, N, 1), dtype=jnp.float32)

    out = jax.block_until_ready(cossim_mlp(prop_state, weight, bias0))
    ref = cossim_mlp_reference(prop_state, weight, bias0)
    assert out.shape == (B, N, N)
    assert jnp.allclose(out, ref, atol=1e-5, rtol=1e-5)

    # Non-zero bias exercises the w.b / |b|^2 terms.
    out = jax.block_until_ready(cossim_mlp(prop_state, weight, bias1))
    ref = cossim_mlp_reference(prop_state, weight, bias1)
    assert jnp.allclose(out, ref, atol=1e-5, rtol=1e-5)

    # Larger, lane-multiple N -> row-tiled path with grid = (B, N // tm) = (2, 2).
    B2, N2 = 2, 256
    prop_state2 = jax.random.normal(k_x2, (B2, N2, 1), dtype=jnp.float32)
    out2 = jax.block_until_ready(cossim_mlp(prop_state2, weight, bias1, tm=128))
    ref2 = cossim_mlp_reference(prop_state2, weight, bias1)
    assert out2.shape == (B2, N2, N2)
    assert jnp.allclose(out2, ref2, atol=1e-5, rtol=1e-5)

    print("KERNEL_OK")
</pallas_src>

<mosaic_0001>
module attributes {stable_mosaic.version = 11 : i64} {
  func.func @_flat_kernel(%arg0: i32, %arg1: memref<3xf32, #tpu.memory_space<smem>>, %arg2: memref<2x256xf32, #tpu.memory_space<vmem>>, %arg3: memref<2x256xf32, #tpu.memory_space<vmem>>, %arg4: memref<2x256xf32, #tpu.memory_space<vmem>>) attributes {dimension_semantics = [#tpu.dimension_semantics<arbitrary>], iteration_bounds = array<i64: 1>, scalar_prefetch = 0 : i64, scratch_operands = 0 : i64, tpu.core_type = #tpu.core_type<tc>, window_params = [{transform_indices = @transform_0, window_bounds = array<i64: 3>}, {pipeline_mode = #tpu.pipeline_mode<synchronous>, transform_indices = @transform_1, window_bounds = array<i64: 2, 256>}, {pipeline_mode = #tpu.pipeline_mode<synchronous>, transform_indices = @transform_2, window_bounds = array<i64: 2, 256>}, {pipeline_mode = #tpu.pipeline_mode<synchronous>, transform_indices = @transform_3, window_bounds = array<i64: 2, 256>}]} {
    %c0 = arith.constant 0 : index
    %0 = memref.load %arg1[%c0] : memref<3xf32, #tpu.memory_space<smem>>
    %c1 = arith.constant 1 : index
    %1 = memref.load %arg1[%c1] : memref<3xf32, #tpu.memory_space<smem>>
    %c2 = arith.constant 2 : index
    %2 = memref.load %arg1[%c2] : memref<3xf32, #tpu.memory_space<smem>>
    %c0_0 = arith.constant 0 : index
    %c0_1 = arith.constant 0 : index
    %3 = vector.load %arg2[%c0_0, %c0_1] : memref<2x256xf32, #tpu.memory_space<vmem>>, vector<2x256xf32>
    %c0_2 = arith.constant 0 : index
    %c0_3 = arith.constant 0 : index
    %4 = vector.load %arg3[%c0_2, %c0_3] : memref<2x256xf32, #tpu.memory_space<vmem>>, vector<2x256xf32>
    %5 = arith.mulf %3, %3 : vector<2x256xf32>
    %6 = vector.broadcast %0 : f32 to vector<2x256xf32>
    %7 = arith.mulf %5, %6 : vector<2x256xf32>
    %cst = arith.constant 2.000000e+00 : f32
    %8 = arith.mulf %cst, %1 : f32
    %9 = vector.broadcast %8 : f32 to vector<2x256xf32>
    %10 = arith.mulf %9, %3 : vector<2x256xf32>
    %11 = arith.addf %7, %10 : vector<2x256xf32>
    %12 = vector.broadcast %2 : f32 to vector<2x256xf32>
    %13 = arith.addf %11, %12 : vector<2x256xf32>
    %14 = arith.mulf %4, %4 : vector<2x256xf32>
    %15 = vector.broadcast %0 : f32 to vector<2x256xf32>
    %16 = arith.mulf %14, %15 : vector<2x256xf32>
    %cst_4 = arith.constant 2.000000e+00 : f32
    %17 = arith.mulf %cst_4, %1 : f32
    %18 = vector.broadcast %17 : f32 to vector<2x256xf32>
    %19 = arith.mulf %18, %4 : vector<2x256xf32>
    %20 = arith.addf %16, %19 : vector<2x256xf32>
    %21 = vector.broadcast %2 : f32 to vector<2x256xf32>
    %22 = arith.addf %20, %21 : vector<2x256xf32>
    %cst_5 = arith.constant 1.000000e-16 : f32
    %23 = vector.broadcast %cst_5 : f32 to vector<2x256xf32>
    %24 = arith.maximumf %13, %23 : vector<2x256xf32>
    %25 = math.rsqrt %24 : vector<2x256xf32>
    %cst_6 = arith.constant 1.000000e-16 : f32
    %26 = vector.broadcast %cst_6 : f32 to vector<2x256xf32>
    %27 = arith.maximumf %22, %26 : vector<2x256xf32>
    %28 = math.rsqrt %27 : vector<2x256xf32>
    %29 = vector.broadcast %0 : f32 to vector<2x256xf32>
    %30 = arith.mulf %3, %29 : vector<2x256xf32>
    %31 = vector.broadcast %1 : f32 to vector<2x256xf32>
    %32 = arith.addf %30, %31 : vector<2x256xf32>
    %33 = arith.mulf %32, %4 : vector<2x256xf32>
    %34 = vector.broadcast %1 : f32 to vector<2x256xf32>
    %35 = arith.mulf %3, %34 : vector<2x256xf32>
    %36 = vector.broadcast %2 : f32 to vector<2x256xf32>
    %37 = arith.addf %35, %36 : vector<2x256xf32>
    %38 = arith.addf %33, %37 : vector<2x256xf32>
    %39 = arith.mulf %38, %25 : vector<2x256xf32>
    %cst_7 = arith.constant 5.000000e-01 : f32
    %40 = vector.broadcast %cst_7 : f32 to vector<2x256xf32>
    %41 = arith.mulf %40, %28 : vector<2x256xf32>
    %42 = arith.mulf %39, %41 : vector<2x256xf32>
    %43 = math.tanh %42 : vector<2x256xf32>
    %cst_8 = arith.constant 5.000000e-01 : f32
    %44 = vector.broadcast %cst_8 : f32 to vector<2x256xf32>
    %45 = arith.mulf %44, %43 : vector<2x256xf32>
    %cst_9 = arith.constant 5.000000e-01 : f32
    %46 = vector.broadcast %cst_9 : f32 to vector<2x256xf32>
    %47 = arith.addf %45, %46 : vector<2x256xf32>
    %c0_10 = arith.constant 0 : index
    %c0_11 = arith.constant 0 : index
    %48 = vector.load %arg4[%c0_10, %c0_11] : memref<2x256xf32, #tpu.memory_space<vmem>>, vector<2x256xf32>
    tpu.vector_store %arg4[%c0_10, %c0_11], %47 {strides = array<i32>} : memref<2x256xf32, #tpu.memory_space<vmem>>, vector<2x256xf32>,
    return
  }
  func.func @transform_0(%arg0: i32) -> i32 {
    %c0_i32 = arith.constant 0 : i32
    %c0_i32_0 = arith.constant 0 : i32
    return %c0_i32 : i32
  }
  func.func @transform_1(%arg0: i32) -> (i32, i32) {
    %c0_i32 = arith.constant 0 : i32
    %c0_i32_0 = arith.constant 0 : i32
    %c0_i32_1 = arith.constant 0 : i32
    return %c0_i32, %c0_i32_0 : i32, i32
  }
  func.func @transform_2(%arg0: i32) -> (i32, i32) {
    %c0_i32 = arith.constant 0 : i32
    %c0_i32_0 = arith.constant 0 : i32
    %c0_i32_1 = arith.constant 0 : i32
    return %c0_i32, %c0_i32_0 : i32, i32
  }
  func.func @transform_3(%arg0: i32) -> (i32, i32) {
    %c0_i32 = arith.constant 0 : i32
    %c0_i32_0 = arith.constant 0 : i32
    %c0_i32_1 = arith.constant 0 : i32
    return %c0_i32, %c0_i32_0 : i32, i32
  }
}

</mosaic_0001>

<bundles_post_ra>
// kernel: tpu_custom_call.1
= control target key start
LH: loop header
LB: loop body
LE: loop exit
PB: predicated region body
PF: predicated region fallthrough
CT: control target
= control target key end

     0   :  { %8 = vsyncpa [#allocation5], 0  ;;  %s270_s0 = inlined_call_operand.hbm [shape: f32[3], index: 0, kind: input, shape index: {}]   ;;  %s271_s1 = inlined_call_operand.hbm [shape: f32[2,256], index: 1, kind: input, shape index: {}]   ;;  %s272_s2 = inlined_call_operand.hbm [shape: f32[2,256], index: 2, kind: input, shape index: {}]   ;;  %s273_s3 = inlined_call_operand.hbm [shape: f32[2,256], index: 3, kind: output, shape index: {}]  }
   0x1   :  { %9 = vsyncpa [#allocation3], 0 }
   0x2   :  { %10 = vsyncpa [#allocation8], 0 }
   0x3   :  { %11 = vsyncpa [#allocation4], 0  ;;  %s17_s14 = sshll.u32 %s270_s0, 4  ;;  %s26_s17 = sshll.u32 %s271_s1, 4  ;;  %s18_s14 = int_to_ptr.hbm [resolvable:$true] %s17_s14  ;;  %s27_s17 = int_to_ptr.hbm [resolvable:$true] %s26_s17 }
   0x4   :  { %s234_s18 = smov [#allocation2]   ;;  %s235_s19 = smov [#allocation6]  }
   0x5   :  { %20 = dma.hbm_to_smem %s18_s14, 16, %s234_s18, [#allocation5]  }
   0x6   :  { %s28_s20 = sshll.u32 %s235_s19, 4  ;;  %s37_s23 = sshll.u32 %s272_s2, 4  ;;  %s29_s20 = int_to_ptr.vmem [resolvable:$true] %s28_s20  ;;  %s38_s23 = int_to_ptr.hbm [resolvable:$true] %s37_s23 }
   0x7   :  { %31 = dma.hbm_to_vmem [thread:$0]  %s27_s17, 64, %s29_s20, [#allocation3]  }
   0x8   :  { %s236_s24 = smov [#allocation7]  }
   0x9   :  { %s39_s25 = sshll.u32 %s236_s24, 4  ;;  %s40_s25 = int_to_ptr.vmem [resolvable:$true] %s39_s25 }
   0xa   :  { %42 = dma.hbm_to_vmem [thread:$0]  %s38_s23, 64, %s40_s25, [#allocation8]  }
   0xb   :  { %226 = dma.done.wait [#allocation5], 16  }
   0xc   :  { %227 = vsyncadd [#allocation5], 4294967280 }
   0xd   :  { %228 = dma.done.wait [#allocation3], 64  }
   0xe   :  { %229 = vsyncadd [#allocation3], 4294967232 }
   0xf   :  { %230 = dma.done.wait [#allocation8], 64  }
  0x10   :  { %231 = vsyncadd [#allocation8], 4294967232 }
  0x11   :  { %55 = sfence }
  0x12   :  { %s56_s0 = sld [smem:[#allocation2]]  ;;  %v59_v0 = vld [vmem:[#allocation6] sm:$0xf]  ;;  %v60_v1 = vld [vmem:[#allocation7] sm:$0xf]  ;;  %s237_s27 = smov [#allocation9]  }
  0x13   :  { %s130_s1 = sld [smem:[#allocation2 + $0x1]]  ;;  %v61_v2 = vmul.f32 %v59_v0, %v59_v0  ;;  %v70_v3 = vmul.f32 %v60_v1, %v60_v1  ;;  %s116_s28 = sshll.u32 %s237_s27, 4  ;;  %s117_s28 = int_to_ptr.vmem [resolvable:$true] %s116_s28 }
  0x14   :  { %s131_s26 = sld [smem:[#allocation2 + $0x2]]  ;;  %s118_s4 = sshll.u32 %s273_s3, 4  ;;  %s119_s4 = int_to_ptr.hbm [resolvable:$true] %s118_s4 }
  0x18   :  { %v62_v4 = vstv %s56_s0 }
  0x19   :  { %s64_s2 = smul.f32 2.0, %s130_s1  ;;  %v63_v5 = vmul.f32 %v62_v4, %v61_v2  ;;  %v71_v6 = vmul.f32 %v70_v3, %v62_v4  ;;  %v97_v17 = vmul.f32 %v62_v4, %v59_v0  ;;  %v98_v18 = vstv %s130_s1 }
  0x1a   :  { %v68_v10 = vstv %s131_s26  ;;  %v101_v21 = vmul.f32 %v98_v18, %v59_v0 }
  0x1b   :  { %v65_v7 = vstv %s64_s2  ;;  %v99_v20 = vadd.f32 %v98_v18, %v97_v17 }
  0x1c   :  { %v66_v8 = vmul.f32 %v65_v7, %v59_v0  ;;  %v72_v9 = vmul.f32 %v65_v7, %v60_v1  ;;  %v102_v28 = vadd.f32 %v101_v21, %v68_v10 }
  0x1d   :  { %v100_v27 = vmul.f32 %v99_v20, %v60_v1 }
  0x1e   :  { %v67_v11 = vadd.f32 %v66_v8, %v63_v5  ;;  %v73_v12 = vadd.f32 %v72_v9, %v71_v6 }
  0x1f   :  { %v103_v33 = vadd.f32 %v102_v28, %v100_v27 }
  0x20   :  { %v69_v13 = vadd.f32 %v68_v10, %v67_v11  ;;  %v74_v14 = vadd.f32 %v73_v12, %v68_v10 }
  0x22   :  { %v75_v15 = vmax.f32 %v69_v13, 1e-16  ;;  %v86_v16 = vmax.f32 %v74_v14, 1e-16 }
  0x24   :  { %136 = vrsqrt.f32 %v75_v15  ;;  %vm82_vm0 = vweird.f32 %v75_v15  ;;  %vm93_vm2 = vweird.f32 %v86_v16 }
  0x25   :  { %138 = vrsqrt.f32 %v86_v16 }
  0x2a   :  { %v137_v19 = vpop.eup %136 }
  0x2b   :  { %v139_v22 = vpop.eup %138  ;;  %v77_v23 = vmul.f32 %v137_v19, %v75_v15  ;;  %vm83_vm1 = vweird.f32 %v137_v19 }
  0x2c   :  { %v88_v24 = vmul.f32 %v139_v22, %v86_v16  ;;  %vm94_vm3 = vweird.f32 %v139_v22  ;;  %vm84_vm4 = vmor %vm82_vm0, %vm83_vm1 }
  0x2d   :  { %v78_v25 = vmul.f32 %v137_v19, %v77_v23  ;;  %vm95_vm5 = vmor %vm93_vm2, %vm94_vm3 }
  0x2e   :  { %v89_v26 = vmul.f32 %v139_v22, %v88_v24 }
  0x2f   :  { %v79_v29 = vmul.f32 0.5, %v78_v25 }
  0x30   :  { %v90_v30 = vmul.f32 0.5, %v89_v26 }
  0x31   :  { %v80_v31 = vsub.f32 1.5, %v79_v29 }
  0x32   :  { %v91_v32 = vsub.f32 1.5, %v90_v30 }
  0x33   :  { %v81_v34 = vmul.f32 %v137_v19, %v80_v31 }
  0x34   :  { %v92_v35 = vmul.f32 %v139_v22, %v91_v32 }
  0x35   :  { %v85_v36 = vsel %vm84_vm4, %v137_v19, %v81_v34 }
  0x36   :  { %v96_v37 = vsel %vm95_vm5, %v139_v22, %v92_v35  ;;  %v104_v38 = vmul.f32 %v103_v33, %v85_v36 }
  0x37   :  { %v105_v39 = vmul.f32 0.5, %v96_v37 }
  0x39   :  { %v106_v40 = vmul.f32 %v105_v39, %v104_v38 }
  0x3b   :  { %140 = vtanh.f32 %v106_v40 }
  0x41   :  { %v141_v41 = vpop.eup %140 }
  0x42   :  { %v108_v42 = vmul.f32 0.5, %v141_v41 }
  0x44   :  { %v109_v43 = vadd.f32 0.5, %v108_v42 }
  0x46   :  { %110 = vst [vmem:[#allocation9] sm:$0xf] %v109_v43 }
  0x47   :  { %121 = dma.vmem_to_hbm [thread:$0]  %s117_s28, 64, %s119_s4, [#allocation4]  }
  0x48   :  { %232 = dma.done.wait [#allocation4], 64  }
  0x49   :  { %233 = vsyncadd [#allocation4], 4294967232 }
  0x4a   :  { %126 = vsyncpa [#allocation3], 1 }
  0x4b   :  { %127 = vsyncpa [#allocation8], 1 }
  0x4c   :  { %128 = vsyncpa [#allocation4], 1 }
  0x4d   :  { %129 = vsyncpa [#allocation5], 1 }

</bundles_post_ra>
